<compile_context>
chip_gen: v7x
topology: tpu7x:2x2x1
jax: 0.10.0
libtpu: 0.0.40
codegen_flags: <defaults>
</compile_context>

<pallas_src>
import jax
import jax.numpy as jnp
from jax import lax
from jax.experimental import pallas as pl
from jax.experimental.pallas import tpu as pltpu


def _round_up(n: int, m: int) -> int:
    return ((n + m - 1) // m) * m


def _pick_tile(H: int, cap: int) -> int:
    """Largest multiple of 128 that divides H and is <= cap; else H (full dim)."""
    if H % 128 != 0:
        # TODO(synk): hidden sizes that are not multiples of 128 fall back to a
        # full-H block (correct, but VMEM-heavy if such an H were also huge).
        return H
    d = (min(cap, H) // 128) * 128
    while d >= 128:
        if H % d == 0:
            return d
        d -= 128
    return H


def resblock_kernel(x_ref, w_ref, xr_ref, b_ref, o_ref, acc_ref):
    """One (tm, tn) output tile, accumulated over the K grid axis.

    x_ref  : (tm, tk) bf16  activation slab (K-slice) for the matmul
    w_ref  : (tn, tk) bf16  weight slab in PyTorch (out, in) layout
    xr_ref : (tm, tn) bf16  activation slab (N-slice) for the residual add
    b_ref  : (1,  tn) bf16  bias slab
    o_ref  : (tm, tn) bf16  output tile
    acc_ref: (tm, tn) f32   VMEM accumulator scratch
    """
    k = pl.program_id(2)

    # bf16 straight into the MXU, f32 accumulation.  Contract x's last dim
    # with the weight's last dim => x @ W^T with the weight in PyTorch layout
    # (Mosaic lowers this as a transposed-RHS matmul; no per-tile XLU xpose).
    partial = lax.dot_general(
        x_ref[...], w_ref[...],
        dimension_numbers=(((1,), (1,)), ((), ())),
        preferred_element_type=jnp.float32,
    )

    @pl.when(k == 0)
    def _():
        acc_ref[...] = partial          # direct assign: no zero-fill + reload

    @pl.when(k > 0)
    def _():
        acc_ref[...] += partial

    @pl.when(k == pl.num_programs(2) - 1)
    def _():
        y = acc_ref[...] + b_ref[...].astype(jnp.float32)
        act = y * jax.nn.sigmoid(y)                       # SiLU in f32 (EUP)
        o_ref[...] = (xr_ref[...].astype(jnp.float32) + act).astype(o_ref.dtype)


def resblock(x, weight, bias, *, tile_m=1024, tile_n=512, tile_k=2048,
             decode_rows=256):
    """x: (..., H); weight: (H, H) PyTorch layout (y = x @ W^T + b); bias: (H,)."""
    orig_shape = x.shape
    H = orig_shape[-1]
    x2 = x.reshape(-1, H)
    M = x2.shape[0]
    itemsize = jnp.dtype(x2.dtype).itemsize

    decode = M <= decode_rows

    # ---- Tile selection -----------------------------------------------------
    if decode:
        # Weight-stream-bound regime: cover the (H, H) weight in a few large
        # slabs.  Keep tn <= H/2 (when possible) so the j axis still has >= 2
        # blocks and both v7x TensorCores get work.
        tk = _pick_tile(H, tile_k)
        tn = _pick_tile(H, max(min(H // 2, 1024), 128))
    else:
        tn = _pick_tile(H, tile_n)
        tk = _pick_tile(H, tile_k)

    if (not decode) and M >= tile_m:
        tm = tile_m
        M_pad = M                      # ragged tail handled by partial-block masking
    else:
        tm = min(_round_up(max(M, 1), 16), tile_m)   # >=16 rows for bf16 packing
        M_pad = _round_up(M, tm)
        if M_pad != M:                 # only small (decode-size) inputs get padded
            x2 = jnp.pad(x2, ((0, M_pad - M), (0, 0)))

    grid_i = pl.cdiv(M_pad, tm)
    grid_j = H // tn
    grid_k = H // tk
    grid = (grid_i, grid_j, grid_k)

    b2 = bias.reshape(1, H)

    # ---- VMEM budget / compiler params --------------------------------------
    w_bufs = 3 if (decode and grid_j * grid_k >= 3) else 2
    vmem_need = itemsize * (2 * tm * tk          # x matmul slabs (double-buffered)
                            + w_bufs * tn * tk   # weight slabs
                            + 2 * tm * tn        # residual slabs
                            + 2 * tn             # bias
                            + 2 * tm * tn)       # output tiles
    vmem_need += 4 * tm * tn                     # f32 accumulator scratch
    vmem_limit = int(min(max(2 * vmem_need, 32 * 1024 * 1024), 48 * 1024 * 1024))

    cost = pl.CostEstimate(
        flops=2 * M_pad * H * H,
        transcendentals=M_pad * H,
        bytes_accessed=(grid_j * M_pad * H       # x re-streamed per column block
                        + grid_i * H * H         # weight re-streamed per row block
                        + 2 * M_pad * H          # residual read + output write
                        + H) * itemsize,
    )

    # ---- BlockSpecs ----------------------------------------------------------
    w_index = lambda i, j, k: (j, k)
    if w_bufs == 3:
        try:
            w_spec = pl.BlockSpec((tn, tk), w_index, pipeline_mode=pl.Buffered(3))
        except TypeError:              # older jax without pipeline_mode kwarg
            w_spec = pl.BlockSpec((tn, tk), w_index)
    else:
        w_spec = pl.BlockSpec((tn, tk), w_index)

    out = pl.pallas_call(
        resblock_kernel,
        out_shape=jax.ShapeDtypeStruct((M_pad, H), x.dtype),
        grid_spec=pltpu.PrefetchScalarGridSpec(
            num_scalar_prefetch=0,
            grid=grid,
            in_specs=[
                pl.BlockSpec((tm, tk), lambda i, j, k: (i, k)),  # x (matmul slab)
                w_spec,                                          # W (PyTorch layout)
                pl.BlockSpec((tm, tn), lambda i, j, k: (i, j)),  # x (residual slab)
                pl.BlockSpec((1, tn),  lambda i, j, k: (0, j)),  # bias
            ],
            out_specs=pl.BlockSpec((tm, tn), lambda i, j, k: (i, j)),
            scratch_shapes=[pltpu.VMEM((tm, tn), jnp.float32)],
        ),
        compiler_params=pltpu.CompilerParams(
            dimension_semantics=("parallel", "parallel", "arbitrary"),
            vmem_limit_bytes=vmem_limit,
        ),
        cost_estimate=cost,
    )(x2, weight, x2, b2)

    if M_pad != M:
        out = out[:M]
    return out.reshape(orig_shape)


if __name__ == "__main__":
    batch, seq, hidden = 2, 8, 32
    dtype = jnp.bfloat16

    key = jax.random.PRNGKey(0)
    kx, kw, kb = jax.random.split(key, 3)

    # PyTorch Linear default bias init: U(-1/sqrt(H), 1/sqrt(H)).
    bound = 1.0 / (hidden ** 0.5)
    bias = jax.random.uniform(kb, (hidden,), minval=-bound, maxval=bound).astype(dtype)
    x = jax.random.normal(kx, (batch, seq, hidden)).astype(dtype)

    def ref_fn(x, w, b):
        xf = x.astype(jnp.float32)
        yf = xf @ w.astype(jnp.float32).T + b.astype(jnp.float32)
        return (xf + yf * jax.nn.sigmoid(yf)).astype(dtype)

    # Check 1: module-faithful zero-initialized weight (as in ResBlock.__init__).
    w_zero = jnp.zeros((hidden, hidden), dtype=dtype)
    out0 = jax.block_until_ready(resblock(x, w_zero, bias))
    assert out0.shape == x.shape and out0.dtype == x.dtype
    assert jnp.allclose(out0.astype(jnp.float32),
                        ref_fn(x, w_zero, bias).astype(jnp.float32),
                        atol=2e-2, rtol=2e-2)

    # Check 2: random weight so the MXU path / W^T layout is actually exercised.
    w_rand = (jax.random.normal(kw, (hidden, hidden)) * 0.1).astype(dtype)
    out1 = jax.block_until_ready(resblock(x, w_rand, bias))
    assert jnp.allclose(out1.astype(jnp.float32),
                        ref_fn(x, w_rand, bias).astype(jnp.float32),
                        atol=2e-2, rtol=2e-2)

    print("KERNEL_OK")
</pallas_src>

<mosaic_0001>
module attributes {stable_mosaic.version = 11 : i64} {
  func.func @resblock_kernel(%arg0: i32, %arg1: i32, %arg2: i32, %arg3: memref<16x32xbf16, #tpu.memory_space<vmem>>, %arg4: memref<32x32xbf16, #tpu.memory_space<vmem>>, %arg5: memref<16x32xbf16, #tpu.memory_space<vmem>>, %arg6: memref<1x32xbf16, #tpu.memory_space<vmem>>, %arg7: memref<16x32xbf16, #tpu.memory_space<vmem>>, %arg8: memref<16x32xf32, #tpu.memory_space<vmem>>) attributes {dimension_semantics = [#tpu.dimension_semantics<parallel>, #tpu.dimension_semantics<parallel>, #tpu.dimension_semantics<arbitrary>], iteration_bounds = array<i64: 1, 1, 1>, scalar_prefetch = 0 : i64, scratch_operands = 1 : i64, tpu.core_type = #tpu.core_type<tc>, window_params = [{transform_indices = @transform_0, window_bounds = array<i64: 16, 32>}, {transform_indices = @transform_1, window_bounds = array<i64: 32, 32>}, {transform_indices = @transform_2, window_bounds = array<i64: 16, 32>}, {transform_indices = @transform_3, window_bounds = array<i64: 1, 32>}, {transform_indices = @transform_4, window_bounds = array<i64: 16, 32>}]} {
    %c0 = arith.constant 0 : index
    %c0_0 = arith.constant 0 : index
    %0 = vector.load %arg3[%c0, %c0_0] : memref<16x32xbf16, #tpu.memory_space<vmem>>, vector<16x32xbf16>
    %c0_1 = arith.constant 0 : index
    %c0_2 = arith.constant 0 : index
    %1 = vector.load %arg4[%c0_1, %c0_2] : memref<32x32xbf16, #tpu.memory_space<vmem>>, vector<32x32xbf16>
    %cst = arith.constant dense<0.000000e+00> : vector<16x32xf32>
    %2 = tpu.matmul %0, %1, %cst {dimension_numbers = #tpu.dot_dimension_numbers<[1], [1], [0], [0], [0, 0, 1, 0], [], []>} : vector<16x32xbf16>, vector<32x32xbf16>, vector<16x32xf32> -> vector<16x32xf32>
    %c0_i32 = arith.constant 0 : i32
    %3 = arith.cmpi eq, %arg2, %c0_i32 : i32
    %4 = arith.extui %3 : i1 to i32
    %c0_i32_3 = arith.constant 0 : i32
    %5 = arith.cmpi ne, %4, %c0_i32_3 : i32
    scf.if %5 {
      %c0_8 = arith.constant 0 : index
      %c0_9 = arith.constant 0 : index
      %12 = vector.load %arg8[%c0_8, %c0_9] : memref<16x32xf32, #tpu.memory_space<vmem>>, vector<16x32xf32>
      tpu.vector_store %arg8[%c0_8, %c0_9], %2 {strides = array<i32>} : memref<16x32xf32, #tpu.memory_space<vmem>>, vector<16x32xf32>,
    } else {
    }
    %c0_i32_4 = arith.constant 0 : i32
    %6 = arith.cmpi sgt, %arg2, %c0_i32_4 : i32
    %7 = arith.extui %6 : i1 to i32
    %c0_i32_5 = arith.constant 0 : i32
    %8 = arith.cmpi ne, %7, %c0_i32_5 : i32
    scf.if %8 {
      %c0_8 = arith.constant 0 : index
      %c0_9 = arith.constant 0 : index
      %12 = vector.load %arg8[%c0_8, %c0_9] : memref<16x32xf32, #tpu.memory_space<vmem>>, vector<16x32xf32>
      %13 = arith.addf %12, %2 : vector<16x32xf32>
      %c0_10 = arith.constant 0 : index
      %c0_11 = arith.constant 0 : index
      %14 = vector.load %arg8[%c0_10, %c0_11] : memref<16x32xf32, #tpu.memory_space<vmem>>, vector<16x32xf32>
      tpu.vector_store %arg8[%c0_10, %c0_11], %13 {strides = array<i32>} : memref<16x32xf32, #tpu.memory_space<vmem>>, vector<16x32xf32>,
    } else {
    }
    %c0_i32_6 = arith.constant 0 : i32
    %9 = arith.cmpi eq, %arg2, %c0_i32_6 : i32
    %10 = arith.extui %9 : i1 to i32
    %c0_i32_7 = arith.constant 0 : i32
    %11 = arith.cmpi ne, %10, %c0_i32_7 : i32
    scf.if %11 {
      %c0_8 = arith.constant 0 : index
      %c0_9 = arith.constant 0 : index
      %12 = vector.load %arg8[%c0_8, %c0_9] : memref<16x32xf32, #tpu.memory_space<vmem>>, vector<16x32xf32>
      %c0_10 = arith.constant 0 : index
      %c0_11 = arith.constant 0 : index
      %13 = vector.load %arg6[%c0_10, %c0_11] : memref<1x32xbf16, #tpu.memory_space<vmem>>, vector<1x32xbf16>
      %14 = arith.extf %13 : vector<1x32xbf16> to vector<1x32xf32>
      %15 = vector.broadcast %14 : vector<1x32xf32> to vector<16x32xf32>
      %16 = arith.addf %12, %15 : vector<16x32xf32>
      %17 = arith.negf %16 : vector<16x32xf32>
      %18 = math.exp %17 : vector<16x32xf32>
      %cst_12 = arith.constant 1.000000e+00 : f32
      %19 = vector.broadcast %cst_12 : f32 to vector<16x32xf32>
      %20 = arith.addf %19, %18 : vector<16x32xf32>
      %21 = arith.divf %19, %20 : vector<16x32xf32>
      %22 = arith.mulf %16, %21 : vector<16x32xf32>
      %c0_13 = arith.constant 0 : index
      %c0_14 = arith.constant 0 : index
      %23 = vector.load %arg5[%c0_13, %c0_14] : memref<16x32xbf16, #tpu.memory_space<vmem>>, vector<16x32xbf16>
      %24 = arith.extf %23 : vector<16x32xbf16> to vector<16x32xf32>
      %25 = arith.addf %24, %22 : vector<16x32xf32>
      %26 = arith.truncf %25 : vector<16x32xf32> to vector<16x32xbf16>
      %c0_15 = arith.constant 0 : index
      %c0_16 = arith.constant 0 : index
      %27 = vector.load %arg7[%c0_15, %c0_16] : memref<16x32xbf16, #tpu.memory_space<vmem>>, vector<16x32xbf16>
      tpu.vector_store %arg7[%c0_15, %c0_16], %26 {strides = array<i32>} : memref<16x32xbf16, #tpu.memory_space<vmem>>, vector<16x32xbf16>,
    } else {
    }
    return
  }
  func.func @transform_0(%arg0: i32, %arg1: i32, %arg2: i32) -> (i32, i32) {
    %c0_i32 = arith.constant 0 : i32
    return %arg0, %arg2 : i32, i32
  }
  func.func @transform_1(%arg0: i32, %arg1: i32, %arg2: i32) -> (i32, i32) {
    %c0_i32 = arith.constant 0 : i32
    return %arg1, %arg2 : i32, i32
  }
  func.func @transform_2(%arg0: i32, %arg1: i32, %arg2: i32) -> (i32, i32) {
    %c0_i32 = arith.constant 0 : i32
    return %arg0, %arg1 : i32, i32
  }
  func.func @transform_3(%arg0: i32, %arg1: i32, %arg2: i32) -> (i32, i32) {
    %c0_i32 = arith.constant 0 : i32
    %c0_i32_0 = arith.constant 0 : i32
    return %c0_i32, %arg1 : i32, i32
  }
  func.func @transform_4(%arg0: i32, %arg1: i32, %arg2: i32) -> (i32, i32) {
    %c0_i32 = arith.constant 0 : i32
    return %arg0, %arg1 : i32, i32
  }
}

</mosaic_0001>

<bundles_post_ra>
// kernel: tpu_custom_call.1
= control target key start
LH: loop header
LB: loop body
LE: loop exit
PB: predicated region body
PF: predicated region fallthrough
CT: control target
= control target key end

     0   :  { %9 = vsyncpa [#allocation4], 0  ;;  %s456_s0 = inlined_call_operand.hbm [shape: bf16[16,32], index: 0, kind: input, shape index: {}]   ;;  %s457_s1 = inlined_call_operand.hbm [shape: bf16[32,32], index: 1, kind: input, shape index: {}]   ;;  %s458_s2 = inlined_call_operand.hbm [shape: bf16[16,32], index: 2, kind: input, shape index: {}]   ;;  %s459_s3 = inlined_call_operand.vmem [shape: bf16[1,32], index: 3, kind: input, shape index: {}]   ;;  %s460_s4 = inlined_call_operand.hbm [shape: bf16[16,32], index: 4, kind: output, shape index: {}]  }
   0x1   :  { %10 = vsyncpa [#allocation7], 0 }
   0x2   :  { %11 = vsyncpa [#allocation5], 0  ;;  %s348_s15 = smov [#allocation6]   ;;  %s349_s17 = smov [#allocation3]  }
   0x3   :  { %s29_s16 = sshll.u32 %s348_s15, 4  ;;  %s17_s18 = sshll.u32 %s349_s17, 4  ;;  %s30_s16 = int_to_ptr.vmem [resolvable:$true] %s29_s16  ;;  %s381_s18 = int_to_ptr.vmem [resolvable:$true] %s17_s18 }
   0x4   :  { %s254_s21 = scalar_lea.hbm %s457_s1, 256 }
   0x5   :  { %p255_p0 = scmp.ne.s32.totalorder %s457_s1, %s254_s21  ;;  %p258_p1 = scmp.lt.u32.totalorder %s254_s21, %s457_s1 }
   0x7   :  { %p260_p2 = pnand %p258_p1, %p255_p0 }
   0x9   :  { %263 = shalt.err (!%p260_p2)
}
   0xa   :  { %s264_s26 = scalar_lea.vmem %s30_s16, 256  ;;  %p269_p4 = scmp.lt.s32.totalorder %s30_s16, %s30_s16 }
   0xb   :  { %p265_p3 = scmp.ne.s32.totalorder %s30_s16, %s264_s26  ;;  %p270_p5 = scmp.lt.s32.totalorder %s264_s26, %s264_s26 }
   0xd   :  { %p271_p6 = por %p270_p5, %p269_p4 }
   0xf   :  { %p272_p7 = pnand %p271_p6, %p265_p3 }
  0x11   :  { %275 = shalt.err (!%p272_p7)
}
  0x12   :  { %s350_s27 = smov 64   ;;  %s351_s28 = smov 4  }
  0x13   :  { %35 = dma.hbm_to_vmem [thread:$0]  %s457_s1, 256, %s30_s16, [#allocation7], %s350_s27, %s350_s27, %s351_s28  }
  0x14   :  { %s276_s7 = scalar_lea.hbm %s456_s0, 128 }
  0x15   :  { %p277_p8 = scmp.ne.s32.totalorder %s456_s0, %s276_s7  ;;  %p280_p9 = scmp.lt.u32.totalorder %s276_s7, %s456_s0 }
  0x17   :  { %p282_p10 = pnand %p280_p9, %p277_p8 }
  0x19   :  { %285 = shalt.err (!%p282_p10)
}
  0x1a   :  { %s286_s12 = scalar_lea.vmem %s381_s18, 128  ;;  %p291_p12 = scmp.lt.s32.totalorder %s381_s18, %s381_s18 }
  0x1b   :  { %p287_p11 = scmp.ne.s32.totalorder %s381_s18, %s286_s12  ;;  %p292_p13 = scmp.lt.s32.totalorder %s286_s12, %s286_s12 }
  0x1d   :  { %p293_p0 = por %p292_p13, %p291_p12 }
  0x1f   :  { %p294_p1 = pnand %p293_p0, %p287_p11 }
  0x21   :  { %297 = shalt.err (!%p294_p1)
}
  0x22   :  { %23 = dma.hbm_to_vmem [thread:$0]  %s456_s0, 128, %s381_s18, [#allocation4], %s350_s27, %s350_s27, %s351_s28  }
  0x23   :  { %s352_s14 = smov [#allocation8]   ;;  %s298_s19 = scalar_lea.hbm %s458_s2, 128 }
  0x24   :  { %s41_s15 = sshll.u32 %s352_s14, 4  ;;  %p299_p2 = scmp.ne.s32.totalorder %s458_s2, %s298_s19  ;;  %s42_s15 = int_to_ptr.vmem [resolvable:$true] %s41_s15 }
  0x25   :  { %p302_p3 = scmp.lt.u32.totalorder %s298_s19, %s458_s2 }
  0x27   :  { %p304_p4 = pnand %p302_p3, %p299_p2 }
  0x29   :  { %307 = shalt.err (!%p304_p4)
}
  0x2a   :  { %s308_s24 = scalar_lea.vmem %s42_s15, 128  ;;  %p313_p6 = scmp.lt.s32.totalorder %s42_s15, %s42_s15 }
  0x2b   :  { %p309_p5 = scmp.ne.s32.totalorder %s42_s15, %s308_s24  ;;  %p314_p7 = scmp.lt.s32.totalorder %s308_s24, %s308_s24 }
  0x2d   :  { %p315_p8 = por %p314_p7, %p313_p6 }
  0x2f   :  { %p316_p9 = pnand %p315_p8, %p309_p5 }
  0x31   :  { %319 = shalt.err (!%p316_p9)
}
  0x32   :  { %47 = dma.hbm_to_vmem [thread:$0]  %s458_s2, 128, %s42_s15, [#allocation7], %s350_s27, %s350_s27, %s351_s28  }
  0x33   :  { %342 = dma.done.wait [#allocation4], 128  }
  0x34   :  { %343 = vsyncadd [#allocation4], 4294967168 }
  0x35   :  { %344 = dma.done.wait [#allocation7], 384  }
  0x36   :  { %345 = vsyncadd [#allocation7], 4294966912  ;;  %v353_v0 = vmov 0.0   ;;  %vm354_vm0 = vmmov 0   ;;  %vm81_vm1 = vcmask 261120   ;;  %v243_v1 = vld [vmem:[#allocation6] sm:$0xff]   ;;  %v155_v6 = vlaneseq }
  0x37   :  { %227 = vmatprep.subr.bf16.mxu0 %v353_v0  ;;  %231 = vmatprep.mubr.msk.bf16.mxu0 %vm354_vm0, %v353_v0  ;;  %v86_v2 = vsel %vm81_vm1, %v243_v1, 0  ;;  %v244_v3 = vld [vmem:[#allocation6 + $0x8] sm:$0xff]   ;;  %v245_v5 = vld [vmem:[#allocation3] sm:$0xff]   ;;  %v221_v26 = vld [vmem:[#allocation8] sm:$0xff]   ;;  %vm189_vm2 = vcmask 257024  }
  0x38   :  { %228 = vmatpush3.bf16.xpose.msra.mxu0 %v86_v2  ;;  %v89_v4 = vsel %vm81_vm1, %v244_v3, 0  ;;  %v156_v7 = vshrl.u32 %v155_v6, 7  ;;  %v153_v8 = vld [vmem:[%s459_s3] sm:$0x1]  ;;  %v222_v27 = vunpack.c.l.bf16 %v221_v26  ;;  %v223_v30 = vunpack.c.h.bf16 %v221_v26  ;;  %s355_s3 = smov [#allocation9]  }
  0x39   :  { %229 = vmatprep.subr.bf16.mxu0 %v353_v0  ;;  %v154_v11 = vunpack.c.l.bf16 %v153_v8  ;;  %s197_s26 = sshll.u32 %s355_s3, 4  ;;  %s198_s26 = int_to_ptr.vmem [resolvable:$true] %s197_s26 }
  0x3a   :  { %v157_v12 = vsub.s32 0, %v156_v7  ;;  %s320_s29 = scalar_lea.vmem %s198_s26, 128  ;;  %p325_p11 = scmp.lt.s32.totalorder %s198_s26, %s198_s26 }
  0x3b   :  { %p321_p10 = scmp.ne.s32.totalorder %s198_s26, %s320_s29  ;;  %p326_p12 = scmp.lt.s32.totalorder %s320_s29, %s320_s29 }
  0x3c   :  { %v158_v15 = vrot.slane %v154_v11, %v157_v12 }
  0x3d   :  { %p327_p13 = por %p326_p12, %p325_p11 }
  0x3f   :  { %p328_p0 = pnand %p327_p13, %p321_p10 }
  0x40   :  { %230 = vmatpush3.bf16.xpose.msra.mxu0 %v89_v4 }
  0x47   :  { %232 = vmatmul.mubr.msk.bf16.vlgmr.msra.gmra.mrb[0].mxu0 %vm81_vm1, %v245_v5 }
 0x11a   :  { %v125_v9 = vpop.f32.mrb[0].mxu0 }
 0x11b   :  { %136 = vst.msk [vmem:[#allocation2] sm:$0xff] %vm81_vm1, %v125_v9  ;;  %v233_v10 = vpop.f32.mrb[1].mxu0 }
 0x11c   :  { %v128_v13 = vpop.f32.mrb[2].mxu0 }
 0x11d   :  { %137 = vst.msk [vmem:[#allocation2 + $0x8] sm:$0xff] %vm81_vm1, %v128_v13  ;;  %v234_v14 = vpop.f32.mrb[3].mxu0 }
 0x122   :  { %v151_v16 = vld [vmem:[#allocation2] sm:$0xff] }
 0x123   :  { %v159_v17 = vadd.f32 %v158_v15, %v151_v16 }
 0x124   :  { %v152_v18 = vld [vmem:[#allocation2 + $0x8] sm:$0xff] }
 0x125   :  { %v160_v19 = vadd.f32 %v158_v15, %v152_v18  ;;  %v214_v20 = vmul.f32 -1.442695, %v159_v17 }
 0x127   :  { %246 = vpow2.f32 %v214_v20  ;;  %v215_v21 = vmul.f32 -1.442695, %v160_v19 }
 0x129   :  { %248 = vpow2.f32 %v215_v21 }
 0x131   :  { %v247_v22 = vpop.eup %246 }
 0x132   :  { %v167_v23 = vadd.f32 1.0, %v247_v22 }
 0x133   :  { %v249_v24 = vpop.eup %248 }
 0x134   :  { %v168_v25 = vadd.f32 1.0, %v249_v24  ;;  %250 = vrcp.f32 %v167_v23 }
 0x136   :  { %252 = vrcp.f32 %v168_v25 }
 0x13e   :  { %v251_v28 = vpop.eup %250 }
 0x13f   :  { %v173_v29 = vmul.f32 %v251_v28, %v159_v17 }
 0x140   :  { %v253_v31 = vpop.eup %252 }
 0x141   :  { %v174_v32 = vmul.f32 %v253_v31, %v160_v19  ;;  %v179_v33 = vadd.f32 %v222_v27, %v173_v29 }
 0x143   :  { %v180_v34 = vadd.f32 %v223_v30, %v174_v32  ;;  %v218_v35 = vpack.c.bf16 %v179_v33, %v179_v33 }
 0x145   :  { %v219_v36 = vpack.c.bf16 %v180_v34, %v180_v34  ;;  %190 = vst.msk [vmem:[#allocation9] sm:$0xf] %vm189_vm2, %v218_v35 }
 0x147   :  { %191 = vst.msk [vmem:[#allocation9 + $0x4] sm:$0xf] %vm189_vm2, %v219_v36 }
 0x148   :  { %331 = shalt.err (!%p328_p0)
}
 0x149   :  { %s332_s6 = scalar_lea.hbm %s460_s4, 128 }
 0x14a   :  { %p333_p1 = scmp.ne.s32.totalorder %s460_s4, %s332_s6  ;;  %p336_p2 = scmp.lt.u32.totalorder %s332_s6, %s460_s4 }
 0x14c   :  { %p338_p3 = pnand %p336_p2, %p333_p1 }
 0x14e   :  { %341 = shalt.err (!%p338_p3)
}
 0x14f   :  { %203 = dma.vmem_to_hbm [thread:$0]  %s198_s26, 128, %s460_s4, [#allocation5], %s350_s27, %s350_s27, %s351_s28  }
 0x150   :  { %346 = dma.done.wait [#allocation5], 128  }
 0x151   :  { %347 = vsyncadd [#allocation5], 4294967168 }
 0x152   :  { %207 = vsyncpa [#allocation4], 1 }
 0x153   :  { %208 = vsyncpa [#allocation7], 1 }
 0x154   :  { %209 = vsyncpa [#allocation5], 1 }

</bundles_post_ra>
